<compile_context>
chip_gen: v5e
topology: v5e:2x2
jax: 0.10.0
libtpu: 0.0.40
codegen_flags: <defaults>
</compile_context>

<pallas_src>
import functools

import jax
import jax.numpy as jnp
from jax.experimental import pallas as pl
from jax.experimental.pallas import tpu as pltpu

_LANE = 128
_BF16_SUBLANE = 16  # bf16 packs 16 rows per vreg tile


def _round_up(x, m):
    return (x + m - 1) // m * m


def _pad2d(a, rows, cols):
    r, c = a.shape
    return jnp.pad(a, ((0, rows - r), (0, cols - c)))


# ----------------------------------------------------------------------------
# Kernels (one grid step = one batch tile; weights/biases are fixed VMEM blocks)
# ----------------------------------------------------------------------------
def _dqn_kernel(x_ref, w1_ref, w2_ref, w3_ref, b_ref, q_ref):
    """Non-dueling DQN: Q = fc3(relu(fc2(relu(fc1(x)))))."""
    wdt = w1_ref.dtype
    h_pad = w1_ref.shape[1]
    out_pad = w3_ref.shape[1]
    b = b_ref[...]                                   # (8, C) f32: rows b1, b2, b3
    x = x_ref[...]                                   # already bf16 (boundary cast)
    h = jnp.dot(x, w1_ref[...], preferred_element_type=jnp.float32) + b[0:1, :h_pad]
    h = jnp.maximum(h, 0.0).astype(wdt)
    h = jnp.dot(h, w2_ref[...], preferred_element_type=jnp.float32) + b[1:2, :h_pad]
    h = jnp.maximum(h, 0.0).astype(wdt)
    q = jnp.dot(h, w3_ref[...], preferred_element_type=jnp.float32) + b[2:3, :out_pad]
    q_ref[...] = q.astype(q_ref.dtype)               # lane-dense (tb, 128) store


def _dqn_dueling_kernel(x_ref, w1_ref, w2_ref, wh_ref, b_ref, q_ref, *,
                        n_actions, dueling_max):
    """Dueling DQN, fused head: lanes [0, A) = adv, lane A = value, rest zero pad."""
    wdt = w1_ref.dtype
    h_pad = w1_ref.shape[1]
    out_pad = wh_ref.shape[1]
    b = b_ref[...]
    x = x_ref[...]
    h = jnp.dot(x, w1_ref[...], preferred_element_type=jnp.float32) + b[0:1, :h_pad]
    h = jnp.maximum(h, 0.0).astype(wdt)
    h = jnp.dot(h, w2_ref[...], preferred_element_type=jnp.float32) + b[1:2, :h_pad]
    h = jnp.maximum(h, 0.0).astype(wdt)
    head = jnp.dot(h, wh_ref[...], preferred_element_type=jnp.float32) + b[2:3, :out_pad]

    lane = jax.lax.broadcasted_iota(jnp.int32, head.shape, 1)
    adv_mask = lane < n_actions
    # value sits in lane `n_actions`; extract via masked lane reduce (XLU).
    value = jnp.sum(jnp.where(lane == n_actions, head, 0.0), axis=1, keepdims=True)
    if dueling_max:
        agg = jnp.max(jnp.where(adv_mask, head, -jnp.inf), axis=1, keepdims=True)
    else:
        agg = jnp.sum(jnp.where(adv_mask, head, 0.0), axis=1, keepdims=True) * (1.0 / n_actions)
    # Lanes >= n_actions hold junk but the wrapper slices [:, :n_actions].
    q_ref[...] = (head + value - agg).astype(q_ref.dtype)


# ----------------------------------------------------------------------------
# Parameter init (mirrors the module's __init__ semantics, then zero-pads)
# ----------------------------------------------------------------------------
def _init_linear_raw(key, in_features, out_features, init_scale):
    """Weights: uniform(-init_scale/sqrt(in), +) as in initialize_weights().
    Biases: PyTorch nn.Linear default uniform(-1/sqrt(in), +) (not re-initialized)."""
    kw, kb = jax.random.split(key)
    y = init_scale / float(in_features) ** 0.5
    yb = 1.0 / float(in_features) ** 0.5
    # Stored transposed vs PyTorch: (in, out) so the kernel computes x @ W.
    w = jax.random.uniform(kw, (in_features, out_features), jnp.float32, -y, y)
    b = jax.random.uniform(kb, (out_features,), jnp.float32, -yb, yb)
    return w, b


def init_dqn_params(key, state_size, n_actions, hidden_size=100, dueling=False,
                    dueling_max=True, init_scale=1.0, param_dtype=jnp.bfloat16):
    s_pad = _round_up(state_size, _BF16_SUBLANE)   # K only padded to the bf16 sublane tile
    h_pad = _round_up(hidden_size, _LANE)
    keys = jax.random.split(key, 4)

    w1, b1 = _init_linear_raw(keys[0], state_size, hidden_size, init_scale)
    w2, b2 = _init_linear_raw(keys[1], hidden_size, hidden_size, init_scale)
    if dueling:
        out_pad = _round_up(n_actions + 1, _LANE)
        wv, bv = _init_linear_raw(keys[2], hidden_size, 1, init_scale)
        wa, ba = _init_linear_raw(keys[3], hidden_size, n_actions, init_scale)
        w3 = jnp.concatenate([wa, wv], axis=1)     # adv lanes [0, A), value lane A
        b3 = jnp.concatenate([ba, bv], axis=0)
    else:
        out_pad = _round_up(n_actions, _LANE)
        w3, b3 = _init_linear_raw(keys[2], hidden_size, n_actions, init_scale)

    # Pack all biases into one (8, C) f32 block: row 0 = b1, row 1 = b2, row 2 = b3/bh.
    c = max(h_pad, out_pad)
    bias = jnp.zeros((8, c), jnp.float32)
    bias = bias.at[0, :b1.shape[0]].set(b1)
    bias = bias.at[1, :b2.shape[0]].set(b2)
    bias = bias.at[2, :b3.shape[0]].set(b3)

    return {
        "w1": _pad2d(w1, s_pad, h_pad).astype(param_dtype),
        "w2": _pad2d(w2, h_pad, h_pad).astype(param_dtype),
        "w3": _pad2d(w3, h_pad, out_pad).astype(param_dtype),
        "bias": bias,
        "meta": dict(state_size=state_size, n_actions=n_actions,
                     hidden_size=hidden_size, dueling=dueling,
                     dueling_max=dueling_max, s_pad=s_pad, h_pad=h_pad,
                     out_pad=out_pad),
    }


# ----------------------------------------------------------------------------
# Wrapper calling pallas_call
# ----------------------------------------------------------------------------
def dqn_forward(params, x, *, block_b=1024):
    meta = params["meta"]
    dueling = meta["dueling"]
    n_actions = meta["n_actions"]
    s_pad, h_pad, out_pad = meta["s_pad"], meta["h_pad"], meta["out_pad"]
    w1, w2, w3, bias = params["w1"], params["w2"], params["w3"], params["bias"]

    B, S = x.shape
    # bf16 at the boundary (halves the only per-step streamed input's HBM bytes).
    xk = x.astype(jnp.bfloat16)
    if S != s_pad:                        # skip the pad op entirely in the aligned case
        xk = jnp.pad(xk, ((0, 0), (0, s_pad - S)))

    # Batch tile: multiple of 16 (bf16 sublane packing), large to amortize per-step
    # overhead, but capped at ~ceil(B/2) so the parallel batch axis has >= 2 steps
    # (keeps both v7x TensorCores busy; no-op on single-TC v5e/v6e). No batch pad:
    # the ragged last block is handled by Pallas (OOB rows dropped on store).
    tb = max(_BF16_SUBLANE,
             min(_round_up(block_b, _BF16_SUBLANE),
                 _round_up(pl.cdiv(B, 2), _BF16_SUBLANE)))
    grid = (pl.cdiv(B, tb),)

    if dueling:
        kernel = functools.partial(_dqn_dueling_kernel, n_actions=n_actions,
                                   dueling_max=meta["dueling_max"])
    else:
        kernel = _dqn_kernel

    def _fixed(a):
        return pl.BlockSpec(a.shape, lambda i: (0,) * a.ndim)

    in_specs = [pl.BlockSpec((tb, s_pad), lambda i: (i, 0)),   # x streamed over batch
                _fixed(w1), _fixed(w2), _fixed(w3), _fixed(bias)]
    out_specs = pl.BlockSpec((tb, out_pad), lambda i: (i, 0))

    flops = 2 * B * (s_pad * h_pad + h_pad * h_pad + h_pad * out_pad)
    bytes_accessed = (xk.size * xk.dtype.itemsize
                      + sum(a.size * a.dtype.itemsize for a in (w1, w2, w3, bias))
                      + B * out_pad * 4)

    q_pad = pl.pallas_call(
        kernel,
        out_shape=jax.ShapeDtypeStruct((B, out_pad), jnp.float32),
        grid=grid,
        in_specs=in_specs,
        out_specs=out_specs,
        compiler_params=pltpu.CompilerParams(dimension_semantics=("parallel",)),
        cost_estimate=pl.CostEstimate(flops=flops, transcendentals=0,
                                      bytes_accessed=bytes_accessed),
    )(xk, w1, w2, w3, bias)
    # Never expose q_pad directly: lanes >= n_actions are meaningless.
    return q_pad[:, :n_actions]


# ----------------------------------------------------------------------------
# Pure-JAX reference (same padded params / same precision) for a sanity check
# ----------------------------------------------------------------------------
def dqn_reference(params, x):
    meta = params["meta"]
    A, S = meta["n_actions"], meta["state_size"]
    s_pad, h_pad, out_pad = meta["s_pad"], meta["h_pad"], meta["out_pad"]
    w1, w2, w3, bias = params["w1"], params["w2"], params["w3"], params["bias"]
    wdt = w1.dtype
    xp = x.astype(wdt)
    if S != s_pad:
        xp = jnp.pad(xp, ((0, 0), (0, s_pad - S)))
    h = jnp.maximum(jnp.dot(xp, w1, preferred_element_type=jnp.float32) + bias[0:1, :h_pad], 0.0)
    h = jnp.maximum(jnp.dot(h.astype(wdt), w2, preferred_element_type=jnp.float32) + bias[1:2, :h_pad], 0.0)
    head = jnp.dot(h.astype(wdt), w3, preferred_element_type=jnp.float32) + bias[2:3, :out_pad]
    if meta["dueling"]:
        adv = head[:, :A]
        value = head[:, A:A + 1]
        if meta["dueling_max"]:
            agg = jnp.max(adv, axis=1, keepdims=True)
        else:
            agg = jnp.mean(adv, axis=1, keepdims=True)
        return value + adv - agg
    return head[:, :A]


if __name__ == "__main__":
    key = jax.random.PRNGKey(0)
    k_params, k_x1, k_x2 = jax.random.split(key, 3)
    n_actions, hidden_size = 8, 100   # hidden=100 exercises the 128-lane padding

    cases = [
        # (batch, state_size, dueling, dueling_max)
        (2, 16, False, True),
        (2, 16, True, True),
        (2, 16, True, False),
        (37, 10, True, True),  # ragged batch tile + non-multiple-of-16 state dim
    ]
    for batch, state_size, dueling, dueling_max in cases:
        kx = k_x1 if batch == 2 else k_x2
        x = jax.random.normal(kx, (batch, state_size), dtype=jnp.float32)
        params = init_dqn_params(k_params, state_size, n_actions, hidden_size,
                                 dueling=dueling, dueling_max=dueling_max,
                                 init_scale=1.0)
        q = jax.block_until_ready(dqn_forward(params, x))
        q_ref = dqn_reference(params, x)
        assert q.shape == (batch, n_actions), q.shape
        assert jnp.allclose(q, q_ref, atol=1e-2, rtol=1e-2), \
            (batch, state_size, dueling, dueling_max)

    print("KERNEL_OK")
</pallas_src>

<mosaic_0001>
module attributes {stable_mosaic.version = 11 : i64} {
  func.func @_dqn_kernel(%arg0: i32, %arg1: memref<16x16xbf16, #tpu.memory_space<vmem>>, %arg2: memref<16x128xbf16, #tpu.memory_space<vmem>>, %arg3: memref<128x128xbf16, #tpu.memory_space<vmem>>, %arg4: memref<128x128xbf16, #tpu.memory_space<vmem>>, %arg5: memref<8x128xf32, #tpu.memory_space<vmem>>, %arg6: memref<16x128xf32, #tpu.memory_space<vmem>>) attributes {dimension_semantics = [#tpu.dimension_semantics<parallel>], iteration_bounds = array<i64: 1>, scalar_prefetch = 0 : i64, scratch_operands = 0 : i64, tpu.core_type = #tpu.core_type<tc>, window_params = [{transform_indices = @transform_0, window_bounds = array<i64: 16, 16>}, {pipeline_mode = #tpu.pipeline_mode<synchronous>, transform_indices = @transform_1, window_bounds = array<i64: 16, 128>}, {pipeline_mode = #tpu.pipeline_mode<synchronous>, transform_indices = @transform_2, window_bounds = array<i64: 128, 128>}, {pipeline_mode = #tpu.pipeline_mode<synchronous>, transform_indices = @transform_3, window_bounds = array<i64: 128, 128>}, {pipeline_mode = #tpu.pipeline_mode<synchronous>, transform_indices = @transform_4, window_bounds = array<i64: 8, 128>}, {transform_indices = @transform_5, window_bounds = array<i64: 16, 128>}]} {
    %c0 = arith.constant 0 : index
    %c0_0 = arith.constant 0 : index
    %0 = vector.load %arg5[%c0, %c0_0] : memref<8x128xf32, #tpu.memory_space<vmem>>, vector<8x128xf32>
    %c0_1 = arith.constant 0 : index
    %c0_2 = arith.constant 0 : index
    %1 = vector.load %arg1[%c0_1, %c0_2] : memref<16x16xbf16, #tpu.memory_space<vmem>>, vector<16x16xbf16>
    %c0_3 = arith.constant 0 : index
    %c0_4 = arith.constant 0 : index
    %2 = vector.load %arg2[%c0_3, %c0_4] : memref<16x128xbf16, #tpu.memory_space<vmem>>, vector<16x128xbf16>
    %cst = arith.constant dense<0.000000e+00> : vector<16x128xf32>
    %3 = tpu.matmul %1, %2, %cst {dimension_numbers = #tpu.dot_dimension_numbers<[1], [0], [0], [1], [0, 0, 1, 1], [], []>} : vector<16x16xbf16>, vector<16x128xbf16>, vector<16x128xf32> -> vector<16x128xf32>
    %4 = vector.extract_strided_slice %0 {offsets = [0, 0], sizes = [1, 128], strides = [1, 1]} : vector<8x128xf32> to vector<1x128xf32>
    %5 = vector.broadcast %4 : vector<1x128xf32> to vector<16x128xf32>
    %6 = arith.addf %3, %5 : vector<16x128xf32>
    %cst_5 = arith.constant 0.000000e+00 : f32
    %7 = vector.broadcast %cst_5 : f32 to vector<16x128xf32>
    %8 = arith.maximumf %6, %7 : vector<16x128xf32>
    %9 = arith.truncf %8 : vector<16x128xf32> to vector<16x128xbf16>
    %c0_6 = arith.constant 0 : index
    %c0_7 = arith.constant 0 : index
    %10 = vector.load %arg3[%c0_6, %c0_7] : memref<128x128xbf16, #tpu.memory_space<vmem>>, vector<128x128xbf16>
    %cst_8 = arith.constant dense<0.000000e+00> : vector<16x128xf32>
    %11 = tpu.matmul %9, %10, %cst_8 {dimension_numbers = #tpu.dot_dimension_numbers<[1], [0], [0], [1], [0, 0, 1, 1], [], []>} : vector<16x128xbf16>, vector<128x128xbf16>, vector<16x128xf32> -> vector<16x128xf32>
    %12 = vector.extract_strided_slice %0 {offsets = [1, 0], sizes = [1, 128], strides = [1, 1]} : vector<8x128xf32> to vector<1x128xf32>
    %13 = vector.broadcast %12 : vector<1x128xf32> to vector<16x128xf32>
    %14 = arith.addf %11, %13 : vector<16x128xf32>
    %cst_9 = arith.constant 0.000000e+00 : f32
    %15 = vector.broadcast %cst_9 : f32 to vector<16x128xf32>
    %16 = arith.maximumf %14, %15 : vector<16x128xf32>
    %17 = arith.truncf %16 : vector<16x128xf32> to vector<16x128xbf16>
    %c0_10 = arith.constant 0 : index
    %c0_11 = arith.constant 0 : index
    %18 = vector.load %arg4[%c0_10, %c0_11] : memref<128x128xbf16, #tpu.memory_space<vmem>>, vector<128x128xbf16>
    %cst_12 = arith.constant dense<0.000000e+00> : vector<16x128xf32>
    %19 = tpu.matmul %17, %18, %cst_12 {dimension_numbers = #tpu.dot_dimension_numbers<[1], [0], [0], [1], [0, 0, 1, 1], [], []>} : vector<16x128xbf16>, vector<128x128xbf16>, vector<16x128xf32> -> vector<16x128xf32>
    %20 = vector.extract_strided_slice %0 {offsets = [2, 0], sizes = [1, 128], strides = [1, 1]} : vector<8x128xf32> to vector<1x128xf32>
    %21 = vector.broadcast %20 : vector<1x128xf32> to vector<16x128xf32>
    %22 = arith.addf %19, %21 : vector<16x128xf32>
    %c0_13 = arith.constant 0 : index
    %c0_14 = arith.constant 0 : index
    %23 = vector.load %arg6[%c0_13, %c0_14] : memref<16x128xf32, #tpu.memory_space<vmem>>, vector<16x128xf32>
    tpu.vector_store %arg6[%c0_13, %c0_14], %22 {strides = array<i32>} : memref<16x128xf32, #tpu.memory_space<vmem>>, vector<16x128xf32>,
    return
  }
  func.func @transform_0(%arg0: i32) -> (i32, i32) {
    %c0_i32 = arith.constant 0 : i32
    %c0_i32_0 = arith.constant 0 : i32
    return %arg0, %c0_i32 : i32, i32
  }
  func.func @transform_1(%arg0: i32) -> (i32, i32) {
    %c0_i32 = arith.constant 0 : i32
    %c0_i32_0 = arith.constant 0 : i32
    %c0_i32_1 = arith.constant 0 : i32
    return %c0_i32, %c0_i32_0 : i32, i32
  }
  func.func @transform_2(%arg0: i32) -> (i32, i32) {
    %c0_i32 = arith.constant 0 : i32
    %c0_i32_0 = arith.constant 0 : i32
    %c0_i32_1 = arith.constant 0 : i32
    return %c0_i32, %c0_i32_0 : i32, i32
  }
  func.func @transform_3(%arg0: i32) -> (i32, i32) {
    %c0_i32 = arith.constant 0 : i32
    %c0_i32_0 = arith.constant 0 : i32
    %c0_i32_1 = arith.constant 0 : i32
    return %c0_i32, %c0_i32_0 : i32, i32
  }
  func.func @transform_4(%arg0: i32) -> (i32, i32) {
    %c0_i32 = arith.constant 0 : i32
    %c0_i32_0 = arith.constant 0 : i32
    %c0_i32_1 = arith.constant 0 : i32
    return %c0_i32, %c0_i32_0 : i32, i32
  }
  func.func @transform_5(%arg0: i32) -> (i32, i32) {
    %c0_i32 = arith.constant 0 : i32
    %c0_i32_0 = arith.constant 0 : i32
    return %arg0, %c0_i32 : i32, i32
  }
}

</mosaic_0001>

<bundles_post_ra>
// kernel: tpu_custom_call.1
= control target key start
LH: loop header
LB: loop body
LE: loop exit
PB: predicated region body
PF: predicated region fallthrough
CT: control target
= control target key end

     0   :  { %10 = vsyncpa [#allocation3], 0  ;;  %s654_s0 = inlined_call_operand.hbm [shape: bf16[2,16], index: 0, kind: input, shape index: {}]   ;;  %s655_s1 = inlined_call_operand.hbm [shape: bf16[16,128], index: 1, kind: input, shape index: {}]   ;;  %s656_s2 = inlined_call_operand.hbm [shape: bf16[128,128], index: 2, kind: input, shape index: {}]   ;;  %s657_s3 = inlined_call_operand.hbm [shape: bf16[128,128], index: 3, kind: input, shape index: {}]   ;;  %s658_s4 = inlined_call_operand.hbm [shape: f32[8,128], index: 4, kind: input, shape index: {}]   ;;  %s659_s5 = inlined_call_operand.hbm [shape: f32[2,128], index: 5, kind: output, shape index: {}]  }
   0x1   :  { %11 = vsyncpa [#allocation6], 0 }
   0x2   :  { %12 = vsyncpa [#allocation9], 0 }
   0x3   :  { %13 = vsyncpa [#allocation4], 0  ;;  %s31_s20 = sshll.u32 %s655_s1, 4  ;;  %s32_s20 = int_to_ptr.hbm [resolvable:$true] %s31_s20 }
   0x4   :  { %17 = vsyncadd [#allocation3], 112  ;;  %s594_s21 = smov [#allocation5]   ;;  %s57_s25 = sshll.u32 %s657_s3, 4  ;;  %s58_s25 = int_to_ptr.hbm [resolvable:$true] %s57_s25 }
   0x5   :  { %s33_s22 = sshll.u32 %s594_s21, 4  ;;  %s595_s26 = smov 64   ;;  %s34_s22 = int_to_ptr.vmem [resolvable:$true] %s33_s22 }
   0x6   :  { %s596_s27 = smov 4   ;;  %s597_s28 = smov [#allocation8]  }
   0x7   :  { %39 = dma.hbm_to_vmem [thread:$0]  %s32_s20, 128, %s34_s22, [#allocation6], %s595_s26, %s595_s26, %s596_s27  }
   0x8   :  { %s59_s29 = sshll.u32 %s597_s28, 4  ;;  %s18_s7 = sshll.u32 %s654_s0, 4  ;;  %s60_s29 = int_to_ptr.vmem [resolvable:$true] %s59_s29  ;;  %s19_s7 = int_to_ptr.hbm [resolvable:$true] %s18_s7 }
   0x9   :  { %65 = dma.hbm_to_vmem [thread:$0]  %s58_s25, 1024, %s60_s29, [#allocation9], %s595_s26, %s595_s26, %s596_s27  }
   0xa   :  { %s598_s1 = smov [#allocation2]   ;;  %s44_s3 = sshll.u32 %s656_s2, 4  ;;  %s45_s3 = int_to_ptr.hbm [resolvable:$true] %s44_s3 }
   0xb   :  { %s20_s8 = sshll.u32 %s598_s1, 4  ;;  %s599_s11 = smov 16   ;;  %s21_s8 = int_to_ptr.vmem [resolvable:$true] %s20_s8 }
   0xc   :  { %s600_s12 = smov 1   ;;  %s601_s13 = smov [#allocation7]  }
   0xd   :  { %26 = dma.hbm_to_vmem [thread:$0]  %s19_s7, 16, %s21_s8, [#allocation3], %s599_s11, %s599_s11, %s600_s12  }
   0xe   :  { %s46_s14 = sshll.u32 %s601_s13, 4  ;;  %s71_s0 = sshll.u32 %s658_s4, 4  ;;  %s47_s14 = int_to_ptr.vmem [resolvable:$true] %s46_s14  ;;  %s72_s0 = int_to_ptr.hbm [resolvable:$true] %s71_s0 }
   0xf   :  { %52 = dma.hbm_to_vmem [thread:$0]  %s45_s3, 1024, %s47_s14, [#allocation6], %s595_s26, %s595_s26, %s596_s27  }
  0x10   :  { %s602_s17 = smov [#allocation10]  }
  0x11   :  { %s73_s18 = sshll.u32 %s602_s17, 4  ;;  %s74_s18 = int_to_ptr.vmem [resolvable:$true] %s73_s18 }
  0x12   :  { %76 = dma.hbm_to_vmem [thread:$0]  %s72_s0, 128, %s74_s18, [#allocation9]  }
  0x13   :  { %586 = dma.done.wait [#allocation3], 128  }
  0x14   :  { %587 = vsyncadd [#allocation3], 4294967168 }
  0x15   :  { %588 = dma.done.wait [#allocation6], 1152  }
  0x16   :  { %589 = vsyncadd [#allocation6], 4294966144 }
  0x17   :  { %590 = dma.done.wait [#allocation9], 1152  }
  0x18   :  { %591 = vsyncadd [#allocation9], 4294966144  ;;  %v413_v0 = vld [vmem:[#allocation5] sm:$0xff]  ;;  %v99_v1 = vld [vmem:[#allocation2] sm:$0x1]  ;;  %vm140_vm0 = vcmask 130048  }
  0x19   :  { %v100_v2 = vld [vmem:[#allocation2 + $0x1] sm:$0x1]  ;;  %150 = vmatpush.bf16.msra.mxu0 %v413_v0  ;;  %v101_v3 = vld [vmem:[#allocation2 + $0x2] sm:$0x1]  ;;  %v102_v4 = vld [vmem:[#allocation2 + $0x3] sm:$0x1] }
  0x1a   :  { %111 = vst [vmem:[#allocation1] ss:$9 sm:$0xff] %v99_v1  ;;  %v421_v5 = vld [vmem:[#allocation7 + $0x38] sm:$0xff]  ;;  %v103_v6 = vld [vmem:[#allocation2 + $0x4] sm:$0x1]  ;;  %v419_v11 = vld [vmem:[#allocation7 + $0x28] sm:$0xff] }
  0x1b   :  { %114 = vst [vmem:[#allocation1 + $0x1] ss:$9 sm:$0xff] %v100_v2  ;;  %v104_v7 = vld [vmem:[#allocation2 + $0x5] sm:$0x1]  ;;  %225 = vmatpush.bf16.msra.mxu1 %v421_v5  ;;  %v105_v9 = vld [vmem:[#allocation2 + $0x6] sm:$0x1] }
  0x1c   :  { %117 = vst [vmem:[#allocation1 + $0x2] ss:$9 sm:$0xff] %v101_v3  ;;  %v420_v8 = vld [vmem:[#allocation7 + $0x30] sm:$0xff]  ;;  %v418_v12 = vld [vmem:[#allocation7 + $0x20] sm:$0xff]  ;;  %v417_v14 = vld [vmem:[#allocation7 + $0x18] sm:$0xff] }
  0x1d   :  { %120 = vst [vmem:[#allocation1 + $0x3] ss:$9 sm:$0xff] %v102_v4  ;;  %v106_v10 = vld [vmem:[#allocation2 + $0x7] sm:$0x1]  ;;  %v415_v16 = vld [vmem:[#allocation7 + $0x8] sm:$0xff]  ;;  %v414_v17 = vld [vmem:[#allocation7] sm:$0xff] }
  0x1e   :  { %123 = vst [vmem:[#allocation1 + $0x4] ss:$9 sm:$0xff] %v103_v6  ;;  %v416_v15 = vld [vmem:[#allocation7 + $0x10] sm:$0xff]  ;;  %v429_v18 = vld [vmem:[#allocation8 + $0x38] sm:$0xff]  ;;  %v427_v20 = vld [vmem:[#allocation8 + $0x28] sm:$0xff] }
  0x1f   :  { %126 = vst [vmem:[#allocation1 + $0x5] ss:$9 sm:$0xff] %v104_v7  ;;  %226 = vmatpush.bf16.msra.mxu1 %v420_v8  ;;  %307 = vmatpush.bf16.msra.mxu2 %v429_v18  ;;  %v428_v19 = vld [vmem:[#allocation8 + $0x30] sm:$0xff]  ;;  %v426_v21 = vld [vmem:[#allocation8 + $0x20] sm:$0xff]  ;;  %v425_v31 = vld [vmem:[#allocation8 + $0x18] sm:$0xff] }
  0x20   :  { %129 = vst [vmem:[#allocation1 + $0x6] ss:$9 sm:$0xff] %v105_v9  ;;  %v98_v22 = vld [vmem:[#allocation10] sm:$0xff]  ;;  %v424_v32 = vld [vmem:[#allocation8 + $0x10] sm:$0xff]  ;;  %v423_v33 = vld [vmem:[#allocation8 + $0x8] sm:$0xff] }
  0x21   :  { %132 = vst [vmem:[#allocation1 + $0x7] ss:$9 sm:$0xff] %v106_v10  ;;  %v109_v24 = vperm.slane %v98_v22, 0  ;;  %v422_v34 = vld [vmem:[#allocation8] sm:$0xff]  ;;  %v176_v36 = vperm.slane %v98_v22, 1  ;;  %v258_v43 = vperm.slane %v98_v22, 2 }
  0x23   :  { %227 = vmatpush.bf16.msra.mxu1 %v419_v11  ;;  %308 = vmatpush.bf16.msra.mxu2 %v428_v19 }
  0x27   :  { %228 = vmatpush.bf16.msra.mxu1 %v418_v12  ;;  %309 = vmatpush.bf16.msra.mxu2 %v427_v20 }
  0x28   :  { %v133_v13 = vld [vmem:[#allocation1] sm:$0xff] }
  0x29   :  { %348 = vmatmul.msk.bf16.vlgmr.msra.gmra.mxu0 %vm140_vm0, %v133_v13 }
  0x2b   :  { %229 = vmatpush.bf16.msra.mxu1 %v417_v14  ;;  %310 = vmatpush.bf16.msra.mxu2 %v426_v21 }
  0x2f   :  { %230 = vmatpush.bf16.msra.mxu1 %v416_v15  ;;  %311 = vmatpush.bf16.msra.mxu2 %v425_v31 }
  0x33   :  { %231 = vmatpush.bf16.msra.mxu1 %v415_v16  ;;  %312 = vmatpush.bf16.msra.mxu2 %v424_v32 }
  0x37   :  { %232 = vmatpush.bf16.msra.mxu1 %v414_v17  ;;  %313 = vmatpush.bf16.msra.mxu2 %v423_v33 }
  0x3b   :  { %314 = vmatpush.bf16.msra.mxu2 %v422_v34 }
  0xa6   :  { %v152_v23 = vpop.f32.mrf.mxu0 }
  0xa7   :  { %v153_v25 = vadd.f32 %v152_v23, %v109_v24 }
  0xa9   :  { %v157_v28 = vmax.f32 %v153_v25, 0.0 }
  0xae   :  { %v154_v26 = vpop.f32.mrf.mxu0 }
  0xaf   :  { %v155_v27 = vadd.f32 %v154_v26, %v109_v24 }
  0xb1   :  { %v158_v29 = vmax.f32 %v155_v27, 0.0 }
  0xb3   :  { %v159_v30 = vpack.c.bf16 %v158_v29, %v157_v28 }
  0xb5   :  { %233 = vmatmul.bf16.vlgmr.msra.gmra.mxu1 %v159_v30 }
 0x132   :  { %v234_v35 = vpop.f32.mrf.mxu1 }
 0x133   :  { %v235_v37 = vadd.f32 %v234_v35, %v176_v36 }
 0x135   :  { %v239_v40 = vmax.f32 %v235_v37, 0.0 }
 0x13a   :  { %v236_v38 = vpop.f32.mrf.mxu1 }
 0x13b   :  { %v237_v39 = vadd.f32 %v236_v38, %v176_v36 }
 0x13d   :  { %v240_v41 = vmax.f32 %v237_v39, 0.0 }
 0x13f   :  { %v241_v42 = vpack.c.bf16 %v240_v41, %v239_v40 }
 0x141   :  { %315 = vmatmul.bf16.vlgmr.msra.gmra.mxu2 %v241_v42 }
 0x1c4   :  { %v316_v44 = vpop.f32.mrf.mxu2 }
 0x1c5   :  { %v317_v45 = vadd.f32 %v316_v44, %v258_v43 }
 0x1c7   :  { %321 = vst [vmem:[#allocation11] sm:$0xff] %v317_v45 }
 0x1cc   :  { %v318_v46 = vpop.f32.mrf.mxu2 }
 0x1cd   :  { %v319_v47 = vadd.f32 %v318_v46, %v258_v43 }
 0x1cf   :  { %322 = vst [vmem:[#allocation11 + $0x8] sm:$0xff] %v319_v47 }
 0x1d0   :  { %326 = vsyncadd [#allocation4], 224  ;;  %s329_s19 = sshll.u32 %s659_s5, 4  ;;  %s603_s20 = smov [#allocation11]   ;;  %s330_s19 = int_to_ptr.hbm [resolvable:$true] %s329_s19 }
 0x1d1   :  { %s327_s21 = sshll.u32 %s603_s20, 4  ;;  %s604_s22 = smov 32   ;;  %s328_s21 = int_to_ptr.vmem [resolvable:$true] %s327_s21 }
 0x1d2   :  { %s605_s23 = smov 2  }
 0x1d3   :  { %335 = dma.vmem_to_hbm [thread:$0]  %s328_s21, 32, %s330_s19, [#allocation4], %s604_s22, %s604_s22, %s605_s23  }
 0x1d4   :  { %592 = dma.done.wait [#allocation4], 256  }
 0x1d5   :  { %593 = vsyncadd [#allocation4], 4294967040 }
 0x1d6   :  { %340 = vsyncpa [#allocation3], 1 }
 0x1d7   :  { %341 = vsyncpa [#allocation6], 1 }
 0x1d8   :  { %342 = vsyncpa [#allocation9], 1 }
 0x1d9   :  { %343 = vsyncpa [#allocation4], 1 }

</bundles_post_ra>
